<compile_context>
chip_gen: v5e
topology: v5e:2x2
jax: 0.10.0
libtpu: 0.0.40
codegen_flags: <defaults>
</compile_context>

<pallas_src>
import math

import jax
import jax.numpy as jnp
from jax.experimental import pallas as pl
from jax.experimental.pallas import tpu as pltpu


NH_PAD = 128      # hidden width padded to one full lane tile
MAX_TILE_N = 256  # token tile on the lane axis (v7x-safe VMEM / vreg budget)


def adecoder_kernel(z_ref, w1_ref, b1_ref, w2_ref, b2_ref, w3_ref, b3_ref, o_ref):
    """Transposed (lane-dense) layout.

    z_ref : (latent_dim, TILE_N)      w1_ref: (NH_PAD, latent_dim)   b1_ref: (NH_PAD, 1)
    w2_ref: (NH_PAD, NH_PAD)          b2_ref: (NH_PAD, 1)
    w3_ref: (obs_dim, NH_PAD)         b3_ref: (obs_dim, 1)
    o_ref : (obs_dim, TILE_N)
    """
    latent_dim = z_ref.shape[0]

    # ReLU on the (squeezed) input tile.
    zr = jnp.maximum(z_ref[...], 0.0)                      # (latent_dim, TILE_N)

    # fc1: K = latent_dim (tiny) -> VPU broadcast-FMA instead of an MXU dot.
    h = b1_ref[...] + w1_ref[:, 0:1] * zr[0:1, :]          # (NH_PAD, TILE_N)
    for k in range(1, latent_dim):                         # static unroll, latent_dim small
        h = h + w1_ref[:, k:k + 1] * zr[k:k + 1, :]
    h = jnp.tanh(h)

    # fc2: dense 128x128 MXU matmul (hidden width zero-padded in the wrapper).
    h = jnp.dot(w2_ref[...], h, preferred_element_type=jnp.float32) + b2_ref[...]
    h = jnp.tanh(h)

    # fc3: (obs_dim, NH_PAD) x (NH_PAD, TILE_N) -> lane-dense output tile.
    o_ref[...] = (
        jnp.dot(w3_ref[...], h, preferred_element_type=jnp.float32) + b3_ref[...]
    )


def prep_params_for_kernel(params, nh_pad=NH_PAD):
    """Transpose weights to (out, in) layout and zero-pad the hidden width to nh_pad.

    Zero padding is exact: padded rows of h1/h2 are tanh(0) = 0 and the padded
    columns of w2t/w3t are zero, so they contribute nothing to the output.
    """
    w1, b1, w2, b2, w3, b3 = params
    ld, nh = w1.shape
    od = w3.shape[1]
    f32 = jnp.float32
    w1t = jnp.zeros((nh_pad, ld), f32).at[:nh, :].set(w1.T.astype(f32))
    b1t = jnp.zeros((nh_pad, 1), f32).at[:nh, 0].set(b1.astype(f32))
    w2t = jnp.zeros((nh_pad, nh_pad), f32).at[:nh, :nh].set(w2.T.astype(f32))
    b2t = jnp.zeros((nh_pad, 1), f32).at[:nh, 0].set(b2.astype(f32))
    w3t = jnp.zeros((od, nh_pad), f32).at[:, :nh].set(w3.T.astype(f32))
    b3t = b3.reshape(od, 1).astype(f32)
    return w1t, b1t, w2t, b2t, w3t, b3t


def adecoder_forward(z, params, *, max_tile_n=MAX_TILE_N):
    """z: any shape whose squeeze() ends in latent_dim (PyTorch ADecoder semantics)."""
    w1, _, _, _, w3, _ = params
    latent_dim = w1.shape[0]
    obs_dim = w3.shape[1]

    # Mirror torch's z.squeeze(): drop all size-1 dims, fold leading dims into tokens.
    zs = jnp.squeeze(z)
    assert zs.shape[-1] == latent_dim, (zs.shape, latent_dim)
    lead_shape = zs.shape[:-1]
    n = math.prod(lead_shape) if lead_shape else 1

    z2d = zs.reshape(n, latent_dim)
    if z2d.dtype != jnp.float32:  # gated cast (free when already f32)
        z2d = z2d.astype(jnp.float32)

    # Lane-dense transposed layout: tokens on the last (lane) axis, padded to the tile.
    tile = min(max_tile_n, ((n + 127) // 128) * 128)
    n_pad = pl.cdiv(n, tile) * tile
    zt = z2d.T
    if n_pad != n:
        zt = jnp.pad(zt, ((0, 0), (0, n_pad - n)))

    w1t, b1t, w2t, b2t, w3t, b3t = prep_params_for_kernel(params)
    nh_pad = w2t.shape[0]

    def const_spec(shape):  # weights / biases: same block every step -> VMEM-resident
        return pl.BlockSpec(shape, lambda i: (0, 0))

    out_t = pl.pallas_call(
        adecoder_kernel,
        out_shape=jax.ShapeDtypeStruct((obs_dim, n_pad), jnp.float32),
        grid=(n_pad // tile,),
        in_specs=[
            pl.BlockSpec((latent_dim, tile), lambda i: (0, i)),  # z tile (double-buffered)
            const_spec((nh_pad, latent_dim)),
            const_spec((nh_pad, 1)),
            const_spec((nh_pad, nh_pad)),
            const_spec((nh_pad, 1)),
            const_spec((obs_dim, nh_pad)),
            const_spec((obs_dim, 1)),
        ],
        out_specs=pl.BlockSpec((obs_dim, tile), lambda i: (0, i)),
        compiler_params=pltpu.CompilerParams(
            dimension_semantics=("parallel",),  # megacore sharding on v7x
        ),
    )(zt, w1t, b1t, w2t, b2t, w3t, b3t)

    out2d = out_t[:, :n].T                                   # (n, obs_dim)
    return out2d.reshape(*lead_shape, obs_dim)


def init_params(key, latent_dim=2, obs_dim=1, nhidden=20):
    """Deterministic PyTorch-Linear-style init. Weights stored as (in, out); biases (out,)."""
    ks = jax.random.split(key, 6)

    def linear(kw, kb, fan_in, fan_out):
        bound = 1.0 / jnp.sqrt(jnp.float32(fan_in))
        w = jax.random.uniform(kw, (fan_in, fan_out), jnp.float32, -bound, bound)
        b = jax.random.uniform(kb, (fan_out,), jnp.float32, -bound, bound)
        return w, b

    w1, b1 = linear(ks[0], ks[1], latent_dim, nhidden)
    w2, b2 = linear(ks[2], ks[3], nhidden, nhidden)
    w3, b3 = linear(ks[4], ks[5], nhidden, obs_dim)
    return (w1, b1, w2, b2, w3, b3)


def adecoder_reference(z, params):
    """Plain-JAX reference reproducing the PyTorch forward."""
    w1, b1, w2, b2, w3, b3 = params
    out = jnp.squeeze(z)
    out = jnp.maximum(out, 0.0)
    out = jnp.tanh(out @ w1 + b1)
    out = jnp.tanh(out @ w2 + b2)
    out = out @ w3 + b3
    return out


if __name__ == "__main__":
    latent_dim, obs_dim, nhidden = 2, 1, 20
    B, S = 2, 8

    key = jax.random.PRNGKey(0)
    k_z, k_p = jax.random.split(key)

    # (B, S, 1, latent_dim): the size-1 dim exercises the z.squeeze() in forward().
    z = jax.random.normal(k_z, (B, S, 1, latent_dim), dtype=jnp.float32)
    params = init_params(k_p, latent_dim, obs_dim, nhidden)

    out = adecoder_forward(z, params)
    out = jax.block_until_ready(out)

    ref = adecoder_reference(z, params)
    assert out.shape == (B, S, obs_dim), out.shape
    assert jnp.allclose(out, ref, atol=1e-5, rtol=1e-5), "mismatch vs reference"

    print("KERNEL_OK")
</pallas_src>

<mosaic_0001>
module attributes {stable_mosaic.version = 11 : i64} {
  func.func @adecoder_kernel(%arg0: i32, %arg1: memref<2x128xf32, #tpu.memory_space<vmem>>, %arg2: memref<128x2xf32, #tpu.memory_space<vmem>>, %arg3: memref<128x1xf32, #tpu.memory_space<vmem>>, %arg4: memref<128x128xf32, #tpu.memory_space<vmem>>, %arg5: memref<128x1xf32, #tpu.memory_space<vmem>>, %arg6: memref<1x128xf32, #tpu.memory_space<vmem>>, %arg7: memref<1x1xf32, #tpu.memory_space<vmem>>, %arg8: memref<1x128xf32, #tpu.memory_space<vmem>>) attributes {dimension_semantics = [#tpu.dimension_semantics<parallel>], iteration_bounds = array<i64: 1>, scalar_prefetch = 0 : i64, scratch_operands = 0 : i64, tpu.core_type = #tpu.core_type<tc>, window_params = [{transform_indices = @transform_0, window_bounds = array<i64: 2, 128>}, {pipeline_mode = #tpu.pipeline_mode<synchronous>, transform_indices = @transform_1, window_bounds = array<i64: 128, 2>}, {pipeline_mode = #tpu.pipeline_mode<synchronous>, transform_indices = @transform_2, window_bounds = array<i64: 128, 1>}, {pipeline_mode = #tpu.pipeline_mode<synchronous>, transform_indices = @transform_3, window_bounds = array<i64: 128, 128>}, {pipeline_mode = #tpu.pipeline_mode<synchronous>, transform_indices = @transform_4, window_bounds = array<i64: 128, 1>}, {pipeline_mode = #tpu.pipeline_mode<synchronous>, transform_indices = @transform_5, window_bounds = array<i64: 1, 128>}, {pipeline_mode = #tpu.pipeline_mode<synchronous>, transform_indices = @transform_6, window_bounds = array<i64: 1, 1>}, {transform_indices = @transform_7, window_bounds = array<i64: 1, 128>}]} {
    %c0 = arith.constant 0 : index
    %c0_0 = arith.constant 0 : index
    %0 = vector.load %arg1[%c0, %c0_0] : memref<2x128xf32, #tpu.memory_space<vmem>>, vector<2x128xf32>
    %cst = arith.constant 0.000000e+00 : f32
    %1 = vector.broadcast %cst : f32 to vector<2x128xf32>
    %2 = arith.maximumf %0, %1 : vector<2x128xf32>
    %c0_1 = arith.constant 0 : index
    %c0_2 = arith.constant 0 : index
    %3 = vector.load %arg3[%c0_1, %c0_2] : memref<128x1xf32, #tpu.memory_space<vmem>>, vector<128x1xf32>
    %c0_3 = arith.constant 0 : index
    %c0_4 = arith.constant 0 : index
    %4 = vector.load %arg2[%c0_3, %c0_4] : memref<128x2xf32, #tpu.memory_space<vmem>>, vector<128x1xf32>
    %5 = vector.extract_strided_slice %2 {offsets = [0, 0], sizes = [1, 128], strides = [1, 1]} : vector<2x128xf32> to vector<1x128xf32>
    %6 = vector.broadcast %4 : vector<128x1xf32> to vector<128x128xf32>
    %7 = vector.broadcast %5 : vector<1x128xf32> to vector<128x128xf32>
    %8 = arith.mulf %6, %7 : vector<128x128xf32>
    %9 = vector.broadcast %3 : vector<128x1xf32> to vector<128x128xf32>
    %10 = arith.addf %9, %8 : vector<128x128xf32>
    %c0_5 = arith.constant 0 : index
    %c1 = arith.constant 1 : index
    %11 = vector.load %arg2[%c0_5, %c1] : memref<128x2xf32, #tpu.memory_space<vmem>>, vector<128x1xf32>
    %12 = vector.extract_strided_slice %2 {offsets = [1, 0], sizes = [1, 128], strides = [1, 1]} : vector<2x128xf32> to vector<1x128xf32>
    %13 = vector.broadcast %11 : vector<128x1xf32> to vector<128x128xf32>
    %14 = vector.broadcast %12 : vector<1x128xf32> to vector<128x128xf32>
    %15 = arith.mulf %13, %14 : vector<128x128xf32>
    %16 = arith.addf %10, %15 : vector<128x128xf32>
    %17 = math.tanh %16 : vector<128x128xf32>
    %c0_6 = arith.constant 0 : index
    %c0_7 = arith.constant 0 : index
    %18 = vector.load %arg4[%c0_6, %c0_7] : memref<128x128xf32, #tpu.memory_space<vmem>>, vector<128x128xf32>
    %cst_8 = arith.constant dense<0.000000e+00> : vector<128x128xf32>
    %19 = tpu.matmul %18, %17, %cst_8 {dimension_numbers = #tpu.dot_dimension_numbers<[1], [0], [0], [1], [0, 0, 1, 1], [], []>} : vector<128x128xf32>, vector<128x128xf32>, vector<128x128xf32> -> vector<128x128xf32>
    %c0_9 = arith.constant 0 : index
    %c0_10 = arith.constant 0 : index
    %20 = vector.load %arg5[%c0_9, %c0_10] : memref<128x1xf32, #tpu.memory_space<vmem>>, vector<128x1xf32>
    %21 = vector.broadcast %20 : vector<128x1xf32> to vector<128x128xf32>
    %22 = arith.addf %19, %21 : vector<128x128xf32>
    %23 = math.tanh %22 : vector<128x128xf32>
    %c0_11 = arith.constant 0 : index
    %c0_12 = arith.constant 0 : index
    %24 = vector.load %arg6[%c0_11, %c0_12] : memref<1x128xf32, #tpu.memory_space<vmem>>, vector<1x128xf32>
    %cst_13 = arith.constant dense<0.000000e+00> : vector<1x128xf32>
    %25 = tpu.matmul %24, %23, %cst_13 {dimension_numbers = #tpu.dot_dimension_numbers<[1], [0], [0], [1], [0, 0, 1, 1], [], []>} : vector<1x128xf32>, vector<128x128xf32>, vector<1x128xf32> -> vector<1x128xf32>
    %c0_14 = arith.constant 0 : index
    %c0_15 = arith.constant 0 : index
    %26 = vector.load %arg7[%c0_14, %c0_15] : memref<1x1xf32, #tpu.memory_space<vmem>>, vector<1x1xf32>
    %27 = vector.broadcast %26 : vector<1x1xf32> to vector<1x128xf32>
    %28 = arith.addf %25, %27 : vector<1x128xf32>
    %c0_16 = arith.constant 0 : index
    %c0_17 = arith.constant 0 : index
    %29 = vector.load %arg8[%c0_16, %c0_17] : memref<1x128xf32, #tpu.memory_space<vmem>>, vector<1x128xf32>
    tpu.vector_store %arg8[%c0_16, %c0_17], %28 {strides = array<i32>} : memref<1x128xf32, #tpu.memory_space<vmem>>, vector<1x128xf32>,
    return
  }
  func.func @transform_0(%arg0: i32) -> (i32, i32) {
    %c0_i32 = arith.constant 0 : i32
    %c0_i32_0 = arith.constant 0 : i32
    return %c0_i32, %arg0 : i32, i32
  }
  func.func @transform_1(%arg0: i32) -> (i32, i32) {
    %c0_i32 = arith.constant 0 : i32
    %c0_i32_0 = arith.constant 0 : i32
    %c0_i32_1 = arith.constant 0 : i32
    return %c0_i32, %c0_i32_0 : i32, i32
  }
  func.func @transform_2(%arg0: i32) -> (i32, i32) {
    %c0_i32 = arith.constant 0 : i32
    %c0_i32_0 = arith.constant 0 : i32
    %c0_i32_1 = arith.constant 0 : i32
    return %c0_i32, %c0_i32_0 : i32, i32
  }
  func.func @transform_3(%arg0: i32) -> (i32, i32) {
    %c0_i32 = arith.constant 0 : i32
    %c0_i32_0 = arith.constant 0 : i32
    %c0_i32_1 = arith.constant 0 : i32
    return %c0_i32, %c0_i32_0 : i32, i32
  }
  func.func @transform_4(%arg0: i32) -> (i32, i32) {
    %c0_i32 = arith.constant 0 : i32
    %c0_i32_0 = arith.constant 0 : i32
    %c0_i32_1 = arith.constant 0 : i32
    return %c0_i32, %c0_i32_0 : i32, i32
  }
  func.func @transform_5(%arg0: i32) -> (i32, i32) {
    %c0_i32 = arith.constant 0 : i32
    %c0_i32_0 = arith.constant 0 : i32
    %c0_i32_1 = arith.constant 0 : i32
    return %c0_i32, %c0_i32_0 : i32, i32
  }
  func.func @transform_6(%arg0: i32) -> (i32, i32) {
    %c0_i32 = arith.constant 0 : i32
    %c0_i32_0 = arith.constant 0 : i32
    %c0_i32_1 = arith.constant 0 : i32
    return %c0_i32, %c0_i32_0 : i32, i32
  }
  func.func @transform_7(%arg0: i32) -> (i32, i32) {
    %c0_i32 = arith.constant 0 : i32
    %c0_i32_0 = arith.constant 0 : i32
    return %c0_i32, %arg0 : i32, i32
  }
}

</mosaic_0001>

<bundles_post_ra>
// kernel: tpu_custom_call.1
= control target key start
LH: loop header
LB: loop body
LE: loop exit
PB: predicated region body
PF: predicated region fallthrough
CT: control target
= control target key end

     0   :  { %s1048_s0 = inlined_call_operand.vmem [shape: f32[2,128], index: 0, kind: input, shape index: {}]   ;;  %s1049_s1 = inlined_call_operand.vmem [shape: f32[128,2], index: 1, kind: input, shape index: {}]   ;;  %s1050_s2 = inlined_call_operand.vmem [shape: f32[128,1], index: 2, kind: input, shape index: {}]   ;;  %s1051_s3 = inlined_call_operand.vmem [shape: f32[128,128], index: 3, kind: input, shape index: {}]   ;;  %s1052_s4 = inlined_call_operand.vmem [shape: f32[128,1], index: 4, kind: input, shape index: {}]   ;;  %s1053_s5 = inlined_call_operand.vmem [shape: f32[1,128], index: 5, kind: input, shape index: {}]   ;;  %s1054_s6 = inlined_call_operand.<no memory space> [shape: f32[1,1], index: 6, kind: input, shape index: {}]   ;;  %s1055_s7 = inlined_call_operand.hbm [shape: f32[1,128], index: 7, kind: output, shape index: {}]  }
   0x1   :  { %v12_v0 = vstv %s1054_s6 }
   0x2   :  { %13 = vst [vmem:[#allocation2] sm:$0x1] %v12_v0 }
   0x3   :  { %v61_v1 = vld [vmem:[%s1049_s1 + $0x70] sm:$0xff]  ;;  %v60_v2 = vld [vmem:[%s1049_s1 + $0x68] sm:$0xff]  ;;  %v46_v3 = vld [vmem:[%s1050_s2 + $0x78] sm:$0xff]  ;;  %v744_v4 = vmov 1   ;;  %v745_v5 = vmov 0  }
   0x4   :  { %645 = vset.pattern.permute.xlu0 %v744_v4  ;;  %644 = vset.pattern.permute.xlu2 %v745_v5 }
   0x5   :  { %642 = vset.pattern.permute.xlu1 %v745_v5  ;;  %313 = vperm.xlu0 %645, %v61_v1  }
   0x6   :  { %130 = vperm.xlu2 %644, %v60_v2   ;;  %237 = vperm.xlu1 %642, %v46_v3  }
   0x7   :  { %14 = vsyncpa [#allocation4], 0  ;;  %v45_v6 = vld [vmem:[%s1050_s2 + $0x70] sm:$0xff]  ;;  %v62_v7 = vld [vmem:[%s1049_s1 + $0x78] sm:$0xff]  ;;  %s746_s27 = smov [#allocation3]   ;;  %s598_s8 = sshll.u32 %s1055_s7, 4  ;;  %s599_s8 = int_to_ptr.hbm [resolvable:$true] %s598_s8 }
   0x8   :  { %v44_v8 = vld [vmem:[%s1050_s2 + $0x68] sm:$0xff]  ;;  %v59_v9 = vld [vmem:[%s1049_s1 + $0x60] sm:$0xff]  ;;  %v58_v10 = vld [vmem:[%s1049_s1 + $0x58] sm:$0xff]  ;;  %s596_s28 = sshll.u32 %s746_s27, 4  ;;  %s597_s28 = int_to_ptr.vmem [resolvable:$true] %s596_s28 }
   0x9   :  { %v43_v11 = vld [vmem:[%s1050_s2 + $0x60] sm:$0xff]  ;;  %v57_v12 = vld [vmem:[%s1049_s1 + $0x50] sm:$0xff]  ;;  %v56_v13 = vld [vmem:[%s1049_s1 + $0x48] sm:$0xff] }
   0xa   :  { %v55_v14 = vld [vmem:[%s1049_s1 + $0x40] sm:$0xff]  ;;  %v42_v15 = vld [vmem:[%s1050_s2 + $0x58] sm:$0xff]  ;;  %v41_v17 = vld [vmem:[%s1050_s2 + $0x50] sm:$0xff] }
   0xb   :  { %v54_v16 = vld [vmem:[%s1049_s1 + $0x38] sm:$0xff]  ;;  %v53_v18 = vld [vmem:[%s1049_s1 + $0x30] sm:$0xff]  ;;  %v40_v19 = vld [vmem:[%s1050_s2 + $0x48] sm:$0xff] }
   0xc   :  { %v52_v20 = vld [vmem:[%s1049_s1 + $0x28] sm:$0xff]  ;;  %v39_v21 = vld [vmem:[%s1050_s2 + $0x40] sm:$0xff]  ;;  %v38_v23 = vld [vmem:[%s1050_s2 + $0x38] sm:$0xff] }
   0xd   :  { %646 = vset.pattern.permute.xlu0 %v745_v5  ;;  %v51_v22 = vld [vmem:[%s1049_s1 + $0x20] sm:$0xff]  ;;  %v50_v24 = vld [vmem:[%s1049_s1 + $0x18] sm:$0xff]  ;;  %v37_v25 = vld [vmem:[%s1050_s2 + $0x30] sm:$0xff] }
   0xe   :  { %643 = vset.pattern.permute.xlu1 %v744_v4  ;;  %232 = vperm.xlu2 %644, %v45_v6   ;;  %v49_v26 = vld [vmem:[%s1049_s1 + $0x10] sm:$0xff]  ;;  %v36_v27 = vld [vmem:[%s1050_s2 + $0x28] sm:$0xff]  ;;  %v35_v30 = vld [vmem:[%s1050_s2 + $0x20] sm:$0xff] }
   0xf   :  { %140 = vperm.xlu0 %646, %v62_v7   ;;  %317 = vperm.xlu1 %643, %v62_v7   ;;  %v48_v29 = vld [vmem:[%s1049_s1 + $0x8] sm:$0xff]  ;;  %v47_v32 = vld [vmem:[%s1049_s1] sm:$0xff]  ;;  %v34_v33 = vld [vmem:[%s1050_s2 + $0x18] sm:$0xff] }
  0x10   :  { %v31_v35 = vld [vmem:[%s1050_s2] sm:$0xff]  ;;  %v33_v38 = vld [vmem:[%s1050_s2 + $0x10] sm:$0xff]  ;;  %v32_v44 = vld [vmem:[%s1050_s2 + $0x8] sm:$0xff] }
  0x11   :  { %v29_v36 = vld [vmem:[%s1048_s0] sm:$0x3]  ;;  %v399_v42 = vld [vmem:[%s1052_s4 + $0x70] sm:$0xff]  ;;  %v396_v52 = vld [vmem:[%s1052_s4 + $0x58] sm:$0xff] }
  0x12   :  { %v30_v40 = vmax.f32 %v29_v36, 0.0  ;;  %v393_v59 = vld [vmem:[%s1052_s4 + $0x40] sm:$0xff] }
  0x14   :  { %v900_v43 = vperm.slane %v30_v40, 0  ;;  %v905_v45 = vperm.slane %v30_v40, 1 }
  0x16   :  { %227 = vperm.xlu2 %644, %v44_v8  }
  0x17   :  { %135 = vperm.xlu0 %646, %v61_v1   ;;  %647 = vset.pattern.permute.xlu1 %v745_v5 }
  0x18   :  { %125 = vperm.xlu1 %647, %v59_v9  }
  0x1e   :  { %120 = vperm.xlu2 %644, %v58_v10  }
  0x1f   :  { %222 = vperm.xlu0 %646, %v43_v11  }
  0x20   :  { %648 = vset.pattern.permute.xlu1 %v744_v4 }
  0x21   :  { %309 = vperm.xlu1 %648, %v60_v2  }
  0x26   :  { %115 = vperm.xlu2 %644, %v57_v12  }
  0x27   :  { %110 = vperm.xlu0 %646, %v56_v13  }
  0x29   :  { %305 = vperm.xlu1 %648, %v59_v9  }
  0x2e   :  { %650 = vset.pattern.permute.xlu2 %v744_v4 }
  0x2f   :  { %301 = vperm.xlu2 %650, %v58_v10   ;;  %105 = vperm.xlu0 %646, %v55_v14  }
  0x31   :  { %649 = vset.pattern.permute.xlu1 %v745_v5 }
  0x32   :  { %217 = vperm.xlu1 %649, %v42_v15  }
  0x37   :  { %297 = vperm.xlu2 %650, %v57_v12   ;;  %100 = vperm.xlu0 %646, %v54_v16  }
  0x3a   :  { %212 = vperm.xlu1 %649, %v41_v17  }
  0x3f   :  { %293 = vperm.xlu2 %650, %v56_v13   ;;  %95 = vperm.xlu0 %646, %v53_v18   ;;  %v387_v13 = vld [vmem:[%s1052_s4 + $0x10] sm:$0xff] }
  0x42   :  { %207 = vperm.xlu1 %649, %v40_v19  }
  0x47   :  { %289 = vperm.xlu2 %650, %v55_v14   ;;  %90 = vperm.xlu0 %646, %v52_v20  }
  0x4a   :  { %202 = vperm.xlu1 %649, %v39_v21   ;;  %v563_v21 = vld [vmem:[#allocation2] sm:$0x1] }
  0x4f   :  { %285 = vperm.xlu2 %650, %v54_v16   ;;  %85 = vperm.xlu0 %646, %v51_v22  }
  0x52   :  { %197 = vperm.xlu1 %649, %v38_v23  }
  0x57   :  { %281 = vperm.xlu2 %650, %v53_v18   ;;  %80 = vperm.xlu0 %646, %v50_v24  }
  0x5a   :  { %192 = vperm.xlu1 %649, %v37_v25  }
  0x5f   :  { %277 = vperm.xlu2 %650, %v52_v20   ;;  %75 = vperm.xlu0 %646, %v49_v26  }
  0x60   :  { %v131_v28 = vpop.permute.xlu2 %130 }
  0x61   :  { %v157_v63 = vmul.f32 %v900_v43, %v131_v28 }
  0x62   :  { %187 = vperm.xlu1 %649, %v36_v27  }
  0x67   :  { %273 = vperm.xlu2 %650, %v51_v22   ;;  %70 = vperm.xlu0 %646, %v48_v29  }
  0x68   :  { %v233_v31 = vpop.permute.xlu2 %232 }
  0x6a   :  { %182 = vperm.xlu1 %649, %v35_v30  }
  0x6f   :  { %269 = vperm.xlu2 %650, %v50_v24   ;;  %65 = vperm.xlu0 %646, %v47_v32  }
  0x70   :  { %v228_v34 = vpop.permute.xlu2 %227 }
  0x71   :  { %v253_v2 = vadd.f32 %v228_v34, %v157_v63 }
  0x72   :  { %177 = vperm.xlu1 %649, %v34_v33  }
  0x77   :  { %265 = vperm.xlu2 %650, %v49_v26   ;;  %162 = vperm.xlu0 %646, %v31_v35   ;;  %v314_v37 = vpop.permute.xlu0 %313 }
  0x78   :  { %v238_v39 = vpop.permute.xlu1 %237  ;;  %v895_v41 = vpop.permute.xlu2 %120  ;;  %v335_v55 = vmul.f32 %v905_v45, %v314_v37 }
  0x79   :  { %v155_v18 = vmul.f32 %v900_v43, %v895_v41 }
  0x7a   :  { %172 = vperm.xlu1 %649, %v33_v38  }
  0x7f   :  { %261 = vperm.xlu2 %650, %v48_v29   ;;  %473 = vperm.xlu0 %646, %v399_v42  }
  0x80   :  { %v909_v51 = vpop.permute.xlu2 %115 }
  0x81   :  { %v141_v46 = vpop.permute.xlu0 %140  ;;  %v318_v47 = vpop.permute.xlu1 %317  ;;  %v154_v25 = vmul.f32 %v900_v43, %v909_v51 }
  0x82   :  { %v159_v48 = vmul.f32 %v900_v43, %v141_v46  ;;  %167 = vperm.xlu1 %649, %v32_v44   ;;  %v336_v50 = vmul.f32 %v905_v45, %v318_v47 }
  0x84   :  { %v255_v49 = vadd.f32 %v238_v39, %v159_v48 }
  0x86   :  { %v352_v53 = vadd.f32 %v336_v50, %v255_v49 }
  0x87   :  { %458 = vperm.xlu0 %646, %v396_v52   ;;  %652 = vset.pattern.permute.xlu2 %v745_v5 }
  0x88   :  { %654 = vtanh.f32 %v352_v53 }
  0x89   :  { %v136_v54 = vpop.permute.xlu0 %135  ;;  %v302_v62 = vpop.permute.xlu2 %301 }
  0x8a   :  { %v158_v56 = vmul.f32 %v900_v43, %v136_v54  ;;  %v126_v57 = vpop.permute.xlu1 %125  ;;  %651 = vset.pattern.permute.xlu1 %v744_v4  ;;  %v390_v4 = vld [vmem:[%s1052_s4 + $0x28] sm:$0xff]  ;;  %v332_v19 = vmul.f32 %v905_v45, %v302_v62 }
  0x8b   :  { %257 = vperm.xlu1 %651, %v47_v32   ;;  %v156_v10 = vmul.f32 %v900_v43, %v126_v57 }
  0x8c   :  { %v254_v58 = vadd.f32 %v233_v31, %v158_v56 }
  0x8e   :  { %v655_v60 = vpop.eup %654  ;;  %v351_v61 = vadd.f32 %v335_v55, %v254_v58 }
  0x8f   :  { %443 = vperm.xlu0 %646, %v393_v59   ;;  %481 = vmatpush.msra.mxu0 %v655_v60 }
  0x90   :  { %656 = vtanh.f32 %v351_v61  ;;  %607 = vmatpush.msra.mxu2 %v655_v60  ;;  %608 = vmatpush.msra.mxu3 %v655_v60 }
  0x91   :  { %v223_v0 = vpop.permute.xlu0 %222  ;;  %v298_v8 = vpop.permute.xlu2 %297 }
  0x92   :  { %v331_v26 = vmul.f32 %v905_v45, %v298_v8 }
  0x93   :  { %v310_v1 = vpop.permute.xlu1 %309  ;;  %653 = vset.pattern.permute.xlu1 %v745_v5  ;;  %v252_v5 = vadd.f32 %v223_v0, %v156_v10 }
  0x94   :  { %v334_v3 = vmul.f32 %v905_v45, %v310_v1 }
  0x96   :  { %v657_v6 = vpop.eup %656  ;;  %v350_v7 = vadd.f32 %v334_v3, %v253_v2 }
  0x97   :  { %428 = vperm.xlu0 %646, %v390_v4   ;;  %482 = vmatpush.msra.mxu0 %v657_v6 }
  0x98   :  { %658 = vtanh.f32 %v350_v7  ;;  %609 = vmatpush.msra.mxu2 %v657_v6  ;;  %610 = vmatpush.msra.mxu3 %v657_v6 }
  0x99   :  { %v111_v9 = vpop.permute.xlu0 %110  ;;  %v294_v17 = vpop.permute.xlu2 %293 }
  0x9a   :  { %v153_v33 = vmul.f32 %v900_v43, %v111_v9  ;;  %v330_v35 = vmul.f32 %v905_v45, %v294_v17 }
  0x9b   :  { %v306_v11 = vpop.permute.xlu1 %305 }
  0x9c   :  { %v333_v12 = vmul.f32 %v905_v45, %v306_v11 }
  0x9e   :  { %v659_v14 = vpop.eup %658  ;;  %v349_v15 = vadd.f32 %v333_v12, %v252_v5 }
  0x9f   :  { %413 = vperm.xlu0 %646, %v387_v13   ;;  %483 = vmatpush.msra.mxu0 %v659_v14 }
  0xa0   :  { %660 = vtanh.f32 %v349_v15  ;;  %611 = vmatpush.msra.mxu2 %v659_v14  ;;  %612 = vmatpush.msra.mxu3 %v659_v14 }
  0xa1   :  { %v106_v16 = vpop.permute.xlu0 %105  ;;  %v290_v28 = vpop.permute.xlu2 %289 }
  0xa2   :  { %v152_v41 = vmul.f32 %v900_v43, %v106_v16  ;;  %v329_v44 = vmul.f32 %v905_v45, %v290_v28 }
  0xa4   :  { %v218_v20 = vpop.permute.xlu1 %217 }
  0xa5   :  { %v251_v22 = vadd.f32 %v218_v20, %v155_v18 }
  0xa6   :  { %v661_v23 = vpop.eup %660 }
  0xa7   :  { %v348_v24 = vadd.f32 %v332_v19, %v251_v22  ;;  %566 = vperm.xlu0 %646, %v563_v21   ;;  %484 = vmatpush.msra.mxu0 %v661_v23 }
  0xa8   :  { %613 = vmatpush.msra.mxu2 %v661_v23  ;;  %614 = vmatpush.msra.mxu3 %v661_v23 }
  0xa9   :  { %662 = vtanh.f32 %v348_v24  ;;  %v101_v27 = vpop.permute.xlu0 %100  ;;  %v286_v38 = vpop.permute.xlu2 %285 }
  0xaa   :  { %v151_v51 = vmul.f32 %v900_v43, %v101_v27  ;;  %v328_v53 = vmul.f32 %v905_v45, %v286_v38 }
  0xac   :  { %v213_v29 = vpop.permute.xlu1 %212 }
  0xad   :  { %v250_v30 = vadd.f32 %v213_v29, %v154_v25 }
  0xaf   :  { %v663_v31 = vpop.eup %662  ;;  %v347_v32 = vadd.f32 %v331_v26, %v250_v30 }
  0xb0   :  { %485 = vmatpush.msra.mxu0 %v663_v31  ;;  %615 = vmatpush.msra.mxu2 %v663_v31 }
  0xb1   :  { %664 = vtanh.f32 %v347_v32  ;;  %616 = vmatpush.msra.mxu3 %v663_v31  ;;  %v96_v36 = vpop.permute.xlu0 %95  ;;  %v282_v50 = vpop.permute.xlu2 %281 }
  0xb2   :  { %v150_v59 = vmul.f32 %v900_v43, %v96_v36  ;;  %v327_v61 = vmul.f32 %v905_v45, %v282_v50  ;;  %v395_v50 = vld [vmem:[%s1052_s4 + $0x50] sm:$0xff] }
  0xb4   :  { %v208_v34 = vpop.permute.xlu1 %207 }
  0xb5   :  { %v249_v37 = vadd.f32 %v208_v34, %v153_v33 }
  0xb7   :  { %v665_v39 = vpop.eup %664  ;;  %v346_v40 = vadd.f32 %v330_v35, %v249_v37 }
  0xb8   :  { %486 = vmatpush.msra.mxu0 %v665_v39  ;;  %617 = vmatpush.msra.mxu2 %v665_v39 }
  0xb9   :  { %666 = vtanh.f32 %v346_v40  ;;  %618 = vmatpush.msra.mxu3 %v665_v39  ;;  %v91_v48 = vpop.permute.xlu0 %90  ;;  %v278_v58 = vpop.permute.xlu2 %277  ;;  %v398_v40 = vld [vmem:[%s1052_s4 + $0x68] sm:$0xff] }
  0xba   :  { %v149_v1 = vmul.f32 %v900_v43, %v91_v48  ;;  %v326_v6 = vmul.f32 %v905_v45, %v278_v58  ;;  %468 = vperm.xlu1 %653, %v398_v40   ;;  %v394_v58 = vld [vmem:[%s1052_s4 + $0x48] sm:$0xff] }
  0xbc   :  { %v203_v42 = vpop.permute.xlu1 %202 }
  0xbd   :  { %v248_v46 = vadd.f32 %v203_v42, %v152_v41 }
  0xbf   :  { %v667_v47 = vpop.eup %666  ;;  %v345_v49 = vadd.f32 %v329_v44, %v248_v46 }
  0xc0   :  { %487 = vmatpush.msra.mxu0 %v667_v47  ;;  %619 = vmatpush.msra.mxu2 %v667_v47 }
  0xc1   :  { %668 = vtanh.f32 %v345_v49  ;;  %620 = vmatpush.msra.mxu3 %v667_v47  ;;  %v86_v57 = vpop.permute.xlu0 %85  ;;  %v274_v3 = vpop.permute.xlu2 %273  ;;  %v400_v49 = vld [vmem:[%s1052_s4 + $0x78] sm:$0xff] }
  0xc2   :  { %v148_v10 = vmul.f32 %v900_v43, %v86_v57  ;;  %v325_v5 = vmul.f32 %v905_v45, %v274_v3  ;;  %478 = vperm.xlu2 %652, %v400_v49   ;;  %453 = vperm.xlu1 %653, %v395_v50   ;;  %v379_v57 = vld [vmem:[%s1051_s3 + $0x50] sm:$0xff]  ;;  %v381_v3 = vld [vmem:[%s1051_s3 + $0x60] sm:$0xff] }
  0xc4   :  { %v198_v52 = vpop.permute.xlu1 %197 }
  0xc5   :  { %v247_v54 = vadd.f32 %v198_v52, %v151_v51  ;;  %v373_v51 = vld [vmem:[%s1051_s3 + $0x20] sm:$0xff]  ;;  %v378_v52 = vld [vmem:[%s1051_s3 + $0x48] sm:$0xff] }
  0xc7   :  { %v669_v55 = vpop.eup %668  ;;  %v344_v56 = vadd.f32 %v328_v53, %v247_v54  ;;  %v397_v53 = vld [vmem:[%s1052_s4 + $0x60] sm:$0xff]  ;;  %v392_v54 = vld [vmem:[%s1052_s4 + $0x38] sm:$0xff] }
  0xc8   :  { %488 = vmatpush.msra.mxu0 %v669_v55  ;;  %621 = vmatpush.msra.mxu2 %v669_v55 }
  0xc9   :  { %670 = vtanh.f32 %v344_v56  ;;  %622 = vmatpush.msra.mxu3 %v669_v55  ;;  %v81_v2 = vpop.permute.xlu0 %80  ;;  %v270_v14 = vpop.permute.xlu2 %269  ;;  %v370_v55 = vld [vmem:[%s1051_s3 + $0x8] sm:$0xff] }
  0xca   :  { %v147_v17 = vmul.f32 %v900_v43, %v81_v2  ;;  %v324_v19 = vmul.f32 %v905_v45, %v270_v14  ;;  %463 = vperm.xlu2 %652, %v397_v53   ;;  %438 = vperm.xlu1 %653, %v392_v54   ;;  %v374_v56 = vld [vmem:[%s1051_s3 + $0x28] sm:$0xff]  ;;  %v376_v2 = vld [vmem:[%s1051_s3 + $0x38] sm:$0xff] }
  0xcc   :  { %v193_v60 = vpop.permute.xlu1 %192 }
  0xcd   :  { %v246_v62 = vadd.f32 %v193_v60, %v150_v59  ;;  %v389_v59 = vld [vmem:[%s1052_s4 + $0x20] sm:$0xff]  ;;  %v371_v60 = vld [vmem:[%s1051_s3 + $0x10] sm:$0xff] }
  0xcf   :  { %v671_v63 = vpop.eup %670  ;;  %v343_v0 = vadd.f32 %v327_v61, %v246_v62  ;;  %v375_v61 = vld [vmem:[%s1051_s3 + $0x30] sm:$0xff]  ;;  %v380_v62 = vld [vmem:[%s1051_s3 + $0x58] sm:$0xff] }
  0xd0   :  { %489 = vmatpush.msra.mxu0 %v671_v63  ;;  %623 = vmatpush.msra.mxu2 %v671_v63 }
  0xd1   :  { %672 = vtanh.f32 %v343_v0  ;;  %624 = vmatpush.msra.mxu3 %v671_v63  ;;  %v76_v12 = vpop.permute.xlu0 %75  ;;  %v266_v24 = vpop.permute.xlu2 %265  ;;  %v386_v63 = vld [vmem:[%s1052_s4 + $0x8] sm:$0xff]  ;;  %v391_v0 = vld [vmem:[%s1052_s4 + $0x30] sm:$0xff] }
  0xd2   :  { %v146_v25 = vmul.f32 %v900_v43, %v76_v12  ;;  %v323_v27 = vmul.f32 %v905_v45, %v266_v24  ;;  %448 = vperm.xlu2 %652, %v394_v58   ;;  %423 = vperm.xlu1 %653, %v389_v59  }
  0xd4   :  { %v188_v4 = vpop.permute.xlu1 %187 }
  0xd5   :  { %v245_v7 = vadd.f32 %v188_v4, %v149_v1  ;;  %v372_v1 = vld [vmem:[%s1051_s3 + $0x18] sm:$0xff] }
  0xd6   :  { %v388_v4 = vld [vmem:[%s1052_s4 + $0x18] sm:$0xff] }
  0xd7   :  { %v673_v8 = vpop.eup %672  ;;  %v342_v9 = vadd.f32 %v326_v6, %v245_v7  ;;  %v377_v6 = vld [vmem:[%s1051_s3 + $0x40] sm:$0xff]  ;;  %v382_v7 = vld [vmem:[%s1051_s3 + $0x68] sm:$0xff] }
  0xd8   :  { %490 = vmatpush.msra.mxu0 %v673_v8  ;;  %625 = vmatpush.msra.mxu2 %v673_v8 }
  0xd9   :  { %674 = vtanh.f32 %v342_v9  ;;  %626 = vmatpush.msra.mxu3 %v673_v8  ;;  %v71_v22 = vpop.permute.xlu0 %70  ;;  %v262_v32 = vpop.permute.xlu2 %261  ;;  %v385_v8 = vld [vmem:[%s1052_s4] sm:$0xff]  ;;  %v383_v9 = vld [vmem:[%s1051_s3 + $0x70] sm:$0xff] }
  0xda   :  { %v145_v33 = vmul.f32 %v900_v43, %v71_v22  ;;  %v322_v35 = vmul.f32 %v905_v45, %v262_v32  ;;  %408 = vperm.xlu1 %653, %v386_v63   ;;  %433 = vperm.xlu2 %652, %v391_v0  }
  0xdc   :  { %v183_v11 = vpop.permute.xlu1 %182 }
  0xdd   :  { %v244_v13 = vadd.f32 %v183_v11, %v148_v10  ;;  %v384_v10 = vld [vmem:[%s1051_s3 + $0x78] sm:$0xff] }
  0xdf   :  { %v675_v15 = vpop.eup %674  ;;  %v341_v16 = vadd.f32 %v325_v5, %v244_v13 }
  0xe0   :  { %491 = vmatpush.msra.mxu0 %v675_v15  ;;  %627 = vmatpush.msra.mxu2 %v675_v15 }
  0xe1   :  { %676 = vtanh.f32 %v341_v16  ;;  %628 = vmatpush.msra.mxu3 %v675_v15  ;;  %v66_v31 = vpop.permute.xlu0 %65 }
  0xe2   :  { %v144_v41 = vmul.f32 %v900_v43, %v66_v31  ;;  %v369_v43 = vld [vmem:[%s1051_s3] sm:$0xff]  ;;  %418 = vperm.xlu2 %652, %v388_v4  }
  0xe4   :  { %v178_v18 = vpop.permute.xlu1 %177 }
  0xe5   :  { %v243_v20 = vadd.f32 %v178_v18, %v147_v17 }
  0xe7   :  { %v677_v21 = vpop.eup %676  ;;  %v340_v23 = vadd.f32 %v324_v19, %v243_v20 }
  0xe8   :  { %492 = vmatpush.msra.mxu0 %v677_v21  ;;  %629 = vmatpush.msra.mxu2 %v677_v21 }
  0xe9   :  { %678 = vtanh.f32 %v340_v23  ;;  %630 = vmatpush.msra.mxu3 %v677_v21  ;;  %v163_v39 = vpop.permute.xlu0 %162 }
  0xea   :  { %v240_v44 = vadd.f32 %v163_v39, %v144_v41  ;;  %403 = vperm.xlu2 %652, %v385_v8  }
  0xec   :  { %v173_v26 = vpop.permute.xlu1 %172 }
  0xed   :  { %v242_v28 = vadd.f32 %v173_v26, %v146_v25 }
  0xef   :  { %v679_v29 = vpop.eup %678  ;;  %v339_v30 = vadd.f32 %v323_v27, %v242_v28 }
  0xf0   :  { %493 = vmatpush.msra.mxu0 %v679_v29  ;;  %631 = vmatpush.msra.mxu2 %v679_v29 }
  0xf1   :  { %680 = vtanh.f32 %v339_v30  ;;  %632 = vmatpush.msra.mxu3 %v679_v29  ;;  %v474_v17 = vpop.permute.xlu0 %473 }
  0xf4   :  { %v168_v34 = vpop.permute.xlu1 %167 }
  0xf5   :  { %v241_v36 = vadd.f32 %v168_v34, %v145_v33 }
  0xf7   :  { %v681_v37 = vpop.eup %680  ;;  %v338_v38 = vadd.f32 %v322_v35, %v241_v36 }
  0xf8   :  { %494 = vmatpush.msra.mxu0 %v681_v37  ;;  %633 = vmatpush.msra.mxu2 %v681_v37 }
  0xf9   :  { %682 = vtanh.f32 %v338_v38  ;;  %634 = vmatpush.msra.mxu3 %v681_v37  ;;  %v459_v24 = vpop.permute.xlu0 %458 }
  0xfd   :  { %v258_v42 = vpop.permute.xlu1 %257 }
  0xfe   :  { %v321_v46 = vmul.f32 %v905_v45, %v258_v42 }
  0xff   :  { %v683_v47 = vpop.eup %682 }
 0x100   :  { %v337_v48 = vadd.f32 %v321_v46, %v240_v44  ;;  %495 = vmatpush.msra.mxu0 %v683_v47  ;;  %635 = vmatpush.msra.mxu2 %v683_v47 }
 0x101   :  { %636 = vmatpush.msra.mxu3 %v683_v47  ;;  %v444_v33 = vpop.permute.xlu0 %443 }
 0x102   :  { %684 = vtanh.f32 %v337_v48 }
 0x108   :  { %v685_v45 = vpop.eup %684 }
 0x109   :  { %496 = vmatpush.msra.mxu0 %v685_v45  ;;  %637 = vmatpush.msra.mxu2 %v685_v45  ;;  %v429_v48 = vpop.permute.xlu0 %428 }
 0x10a   :  { %638 = vmatpush.msra.mxu3 %v685_v45  ;;  %497 = vmatmul.f32.vlgmr.msra.gmra.mxu0 %v369_v43 }
 0x10b   :  { %509 = vmatmul.f32.vlgmr.msra.gmra.mxu2 %v373_v51  ;;  %524 = vmatmul.f32.vlgmr.msra.gmra.mxu3 %v378_v52 }
 0x112   :  { %500 = vmatmul.f32.gmra.mxu0 %v370_v55 }
 0x113   :  { %512 = vmatmul.f32.gmra.mxu2 %v374_v56  ;;  %527 = vmatmul.f32.gmra.mxu3 %v379_v57 }
 0x11a   :  { %503 = vmatmul.f32.gmra.mxu0 %v371_v60  ;;  %v414_v60 = vpop.permute.xlu0 %413 }
 0x11b   :  { %515 = vmatmul.f32.gmra.mxu2 %v375_v61  ;;  %530 = vmatmul.f32.gmra.mxu3 %v380_v62 }
 0x11c   :  { %v479_v15 = vpop.permute.xlu2 %478 }
 0x122   :  { %506 = vmatmul.f32.gmra.mxu0 %v372_v1 }
 0x123   :  { %518 = vmatmul.f32.gmra.mxu2 %v376_v2  ;;  %533 = vmatmul.f32.gmra.mxu3 %v381_v3 }
 0x124   :  { %v464_v19 = vpop.permute.xlu2 %463 }
 0x12b   :  { %521 = vmatmul.f32.gmra.mxu2 %v377_v6  ;;  %536 = vmatmul.f32.gmra.mxu3 %v382_v7 }
 0x12c   :  { %v469_v20 = vpop.permute.xlu1 %468  ;;  %v449_v25 = vpop.permute.xlu2 %448 }
 0x133   :  { %539 = vmatmul.f32.gmra.mxu3 %v383_v9 }
 0x134   :  { %v454_v26 = vpop.permute.xlu1 %453  ;;  %v434_v35 = vpop.permute.xlu2 %433 }
 0x13b   :  { %542 = vmatmul.f32.gmra.mxu3 %v384_v10  ;;  %v562_v10 = vld [vmem:[%s1053_s5] sm:$0x1] }
 0x13c   :  { %v439_v36 = vpop.permute.xlu1 %438  ;;  %v419_v43 = vpop.permute.xlu2 %418 }
 0x144   :  { %v424_v45 = vpop.permute.xlu1 %423  ;;  %v404_v0 = vpop.permute.xlu2 %403 }
 0x14c   :  { %v409_v61 = vpop.permute.xlu1 %408 }
 0x187   :  { %v1039_v22 = vpop.f32.mrf.mxu0 }
 0x188   :  { %v499_v4 = vadd.f32 %v1039_v22, %v404_v0 }
 0x18e   :  { %v525_v11 = vpop.f32.mrf.mxu3  ;;  %v510_v13 = vpop.f32.mrf.mxu2 }
 0x18f   :  { %v501_v31 = vpop.f32.mrf.mxu0  ;;  %v526_v42 = vadd.f32 %v525_v11, %v449_v25  ;;  %v511_v57 = vadd.f32 %v510_v13, %v424_v45 }
 0x190   :  { %v502_v2 = vadd.f32 %v501_v31, %v409_v61 }
 0x196   :  { %v528_v5 = vpop.f32.mrf.mxu3  ;;  %v513_v16 = vpop.f32.mrf.mxu2 }
 0x197   :  { %v529_v39 = vadd.f32 %v528_v5, %v454_v26  ;;  %v504_v44 = vpop.f32.mrf.mxu0  ;;  %v514_v54 = vadd.f32 %v513_v16, %v429_v48  ;;  %v567_v5 = vpop.permute.xlu0 %566 }
 0x198   :  { %v505_v63 = vadd.f32 %v504_v44, %v414_v60 }
 0x19e   :  { %v531_v12 = vpop.f32.mrf.mxu3  ;;  %v516_v21 = vpop.f32.mrf.mxu2 }
 0x19f   :  { %v532_v37 = vadd.f32 %v531_v12, %v459_v24  ;;  %v517_v52 = vadd.f32 %v516_v21, %v434_v35  ;;  %v507_v55 = vpop.f32.mrf.mxu0  ;;  %v569_v12 = vperm.slane %v567_v5, 0 }
 0x1a0   :  { %v508_v59 = vadd.f32 %v507_v55, %v419_v43 }
 0x1a6   :  { %v534_v14 = vpop.f32.mrf.mxu3  ;;  %v519_v27 = vpop.f32.mrf.mxu2 }
 0x1a7   :  { %v535_v34 = vadd.f32 %v534_v14, %v464_v19  ;;  %v520_v50 = vadd.f32 %v519_v27, %v439_v36 }
 0x1ae   :  { %v537_v18 = vpop.f32.mrf.mxu3  ;;  %v522_v40 = vpop.f32.mrf.mxu2 }
 0x1af   :  { %v538_v32 = vadd.f32 %v537_v18, %v469_v20  ;;  %v523_v47 = vadd.f32 %v522_v40, %v444_v33 }
 0x1b6   :  { %v540_v23 = vpop.f32.mrf.mxu3 }
 0x1b7   :  { %v541_v29 = vadd.f32 %v540_v23, %v474_v17 }
 0x1be   :  { %v543_v28 = vpop.f32.mrf.mxu3 }
 0x1bf   :  { %v544_v30 = vadd.f32 %v543_v28, %v479_v15 }
 0x1c1   :  { %686 = vtanh.f32 %v544_v30 }
 0x1c2   :  { %688 = vtanh.f32 %v541_v29 }
 0x1c3   :  { %690 = vtanh.f32 %v538_v32 }
 0x1c4   :  { %692 = vtanh.f32 %v535_v34 }
 0x1c5   :  { %694 = vtanh.f32 %v532_v37 }
 0x1c6   :  { %696 = vtanh.f32 %v529_v39 }
 0x1c7   :  { %v687_v38 = vpop.eup %686  ;;  %698 = vtanh.f32 %v526_v42 }
 0x1c8   :  { %570 = vmatpush.msra.mxu1 %v687_v38  ;;  %v689_v41 = vpop.eup %688  ;;  %700 = vtanh.f32 %v523_v47 }
 0x1c9   :  { %v691_v46 = vpop.eup %690  ;;  %702 = vtanh.f32 %v520_v50 }
 0x1ca   :  { %571 = vmatpush.msra.mxu1 %v689_v41  ;;  %v693_v49 = vpop.eup %692  ;;  %704 = vtanh.f32 %v517_v52 }
 0x1cb   :  { %v695_v51 = vpop.eup %694  ;;  %706 = vtanh.f32 %v514_v54 }
 0x1cc   :  { %572 = vmatpush.msra.mxu1 %v691_v46  ;;  %v697_v53 = vpop.eup %696  ;;  %708 = vtanh.f32 %v511_v57 }
 0x1cd   :  { %v699_v56 = vpop.eup %698  ;;  %710 = vtanh.f32 %v508_v59 }
 0x1ce   :  { %573 = vmatpush.msra.mxu1 %v693_v49  ;;  %v701_v58 = vpop.eup %700  ;;  %712 = vtanh.f32 %v505_v63 }
 0x1cf   :  { %v703_v62 = vpop.eup %702  ;;  %714 = vtanh.f32 %v502_v2 }
 0x1d0   :  { %574 = vmatpush.msra.mxu1 %v695_v51  ;;  %v705_v1 = vpop.eup %704  ;;  %716 = vtanh.f32 %v499_v4 }
 0x1d1   :  { %v707_v3 = vpop.eup %706 }
 0x1d2   :  { %575 = vmatpush.msra.mxu1 %v697_v53  ;;  %v709_v6 = vpop.eup %708 }
 0x1d3   :  { %v711_v7 = vpop.eup %710 }
 0x1d4   :  { %576 = vmatpush.msra.mxu1 %v699_v56  ;;  %v713_v8 = vpop.eup %712 }
 0x1d5   :  { %v715_v9 = vpop.eup %714 }
 0x1d6   :  { %577 = vmatpush.msra.mxu1 %v701_v58  ;;  %v717_v11 = vpop.eup %716 }
 0x1d8   :  { %578 = vmatpush.msra.mxu1 %v703_v62 }
 0x1da   :  { %579 = vmatpush.msra.mxu1 %v705_v1 }
 0x1dc   :  { %580 = vmatpush.msra.mxu1 %v707_v3 }
 0x1de   :  { %581 = vmatpush.msra.mxu1 %v709_v6 }
 0x1e0   :  { %582 = vmatpush.msra.mxu1 %v711_v7 }
 0x1e2   :  { %583 = vmatpush.msra.mxu1 %v713_v8 }
 0x1e4   :  { %584 = vmatpush.msra.mxu1 %v715_v9 }
 0x1e6   :  { %585 = vmatpush.msra.mxu1 %v717_v11 }
 0x1e7   :  { %586 = vmatmul.f32.vlgmr.msra.gmra.mxu1 %v562_v10 }
 0x264   :  { %v587_v13 = vpop.f32.mrf.mxu1 }
 0x265   :  { %v588_v14 = vadd.f32 %v587_v13, %v569_v12 }
 0x267   :  { %590 = vst [vmem:[#allocation3] sm:$0x1] %v588_v14 }
 0x268   :  { %601 = dma.vmem_to_hbm [thread:$0]  %s597_s28, 16, %s599_s8, [#allocation4]  }
 0x269   :  { %742 = dma.done.wait [#allocation4], 16  }
 0x26a   :  { %743 = vsyncadd [#allocation4], 4294967280 }
 0x26b   :  { %606 = vsyncpa [#allocation4], 1 }

</bundles_post_ra>
